<compile_context>
chip_gen: v6e
topology: v6e:2x2x1
jax: 0.10.0
libtpu: 0.0.40
codegen_flags: <defaults>
</compile_context>

<pallas_src>
import jax
import jax.numpy as jnp
from jax.experimental import pallas as pl
from jax.experimental.pallas import tpu as pltpu

# Small, module-consistent shapes (BERT hidden / clip_head out scaled down).
B, S, H, F, O, V = 2, 8, 32, 64, 64, 64   # batch, seq, hidden, ffn, out_features, vocab
LANE = 128                                # TPU lane width (lane-dense output / vec padding)

# Row indices of the packed bias / LayerNorm operand (each row padded to LANE lanes).
R_BQKV, R_BO, R_LN1G, R_LN1B, R_B1, R_B2, R_LN2G, R_LN2B, R_BH = range(9)
NVEC = 9


def _layernorm(x, g, b, eps=1e-5):
    mu = jnp.mean(x, axis=-1, keepdims=True)
    var = jnp.mean((x - mu) ** 2, axis=-1, keepdims=True)
    return (x - mu) * jax.lax.rsqrt(var + eps) * g + b


def text_model_kernel(x_ref, mask_ref, wqkv_ref, wo_ref, w1_ref, w2_ref,
                      wh_ref, vecs_ref, out_ref):
    # Whole batch in one invocation: x is (B*S, H), mask is (B, S) float.
    x = x_ref[...]
    m = mask_ref[...]
    vec = vecs_ref[...]                                 # (NVEC, LANE)

    bqkv  = vec[R_BQKV:R_BQKV + 1, :3 * H]              # (1, 3H)
    bo    = vec[R_BO:R_BO + 1, :H]
    ln1_g = vec[R_LN1G:R_LN1G + 1, :H]
    ln1_b = vec[R_LN1B:R_LN1B + 1, :H]
    b1    = vec[R_B1:R_B1 + 1, :F]
    b2    = vec[R_B2:R_B2 + 1, :H]
    ln2_g = vec[R_LN2G:R_LN2G + 1, :H]
    ln2_b = vec[R_LN2B:R_LN2B + 1, :H]
    bh    = vec[R_BH:R_BH + 1, :]                       # (1, LANE), zero past O

    # --- fused QKV projection (1/sqrt(H) pre-folded into the Q columns) -------
    # TODO(synk): original module uses a full pretrained multi-layer multi-head
    # BERT; only a 1-layer, 1-head deterministic stand-in is implemented.
    qkv = jnp.dot(x, wqkv_ref[...], preferred_element_type=jnp.float32) + bqkv  # (B*S, 3H)
    q = qkv[:, 0 * H:1 * H].reshape(B, S, H)
    k = qkv[:, 1 * H:2 * H].reshape(B, S, H)
    v = qkv[:, 2 * H:3 * H].reshape(B, S, H)

    # --- single-head self-attention, batched over B (no explicit transposes) --
    s = jnp.einsum("bqd,bkd->bqk", q, k, preferred_element_type=jnp.float32)    # (B,S,S)
    s = jnp.where(m[:, None, :] > 0.5, s, -1e9)          # mask padded keys
    p = jax.nn.softmax(s, axis=-1)
    attn = jnp.einsum("bqk,bkd->bqd", p, v,
                      preferred_element_type=jnp.float32).reshape(B * S, H)
    attn = jnp.dot(attn, wo_ref[...], preferred_element_type=jnp.float32) + bo
    h = _layernorm(x + attn, ln1_g, ln1_b)

    # --- feed-forward ----------------------------------------------------------
    ff = jax.nn.gelu(jnp.dot(h, w1_ref[...], preferred_element_type=jnp.float32) + b1,
                     approximate=True)
    ff = jnp.dot(ff, w2_ref[...], preferred_element_type=jnp.float32) + b2
    embs = _layernorm(h + ff, ln2_g, ln2_b)              # (B*S, H) "last hidden state"

    # --- masked mean pooling: batched matvec on the MXU ------------------------
    # TODO(synk): an all-padding sequence divides by 0 (NaN), same as the reference module.
    embs_b = embs.reshape(B, S, H)
    pooled = jnp.einsum("bqs,bsh->bqh", m[:, None, :], embs_b,
                        preferred_element_type=jnp.float32).reshape(B, H)        # (B, H)
    denom = jnp.sum(m, axis=1, keepdims=True)                                    # (B, 1)
    pooled = pooled * pl.reciprocal(denom, approx=False)

    # --- clip_head linear (lane-padded to 128 -> lane-dense store) -------------
    out_ref[...] = jnp.dot(pooled, wh_ref[...],
                           preferred_element_type=jnp.float32) + bh              # (B, LANE)


def pack_params(p):
    """Fold the attention scale into Wq, fuse QKV, lane-pad the head weight and
    pack all 1-row bias / LayerNorm vectors into a single (NVEC, LANE) operand."""
    scale = 1.0 / (H ** 0.5)
    wqkv = jnp.concatenate([p["wq"] * scale, p["wk"], p["wv"]], axis=1)          # (H, 3H)
    bqkv = jnp.concatenate([p["bq"] * scale, p["bk"], p["bv"]], axis=1)          # (1, 3H)
    wh_pad = jnp.zeros((H, LANE), jnp.float32).at[:, :O].set(p["wh"])

    def row(v):
        return jnp.zeros((1, LANE), jnp.float32).at[:, :v.shape[1]].set(v)

    vecs = jnp.concatenate(
        [row(bqkv), row(p["bo"]), row(p["ln1_g"]), row(p["ln1_b"]),
         row(p["b1"]), row(p["b2"]), row(p["ln2_g"]), row(p["ln2_b"]),
         row(p["bh"])], axis=0)                                                  # (NVEC, LANE)
    return {"wqkv": wqkv, "wo": p["wo"], "w1": p["w1"], "w2": p["w2"],
            "wh_pad": wh_pad, "vecs": vecs}


def text_model_forward(x_emb, att_mask, packed):
    x2d = x_emb.reshape(B * S, H).astype(jnp.float32)          # fold batch into matmul rows
    mask = att_mask.astype(jnp.float32)                        # (B, S)
    vmem = pl.BlockSpec(memory_space=pltpu.MemorySpace.VMEM)   # everything resident, no grid
    out = pl.pallas_call(
        text_model_kernel,
        out_shape=jax.ShapeDtypeStruct((B, LANE), jnp.float32),
        in_specs=[vmem] * 8,
        out_specs=vmem,
    )(x2d, mask, packed["wqkv"], packed["wo"], packed["w1"],
      packed["w2"], packed["wh_pad"], packed["vecs"])
    return out[:, :O]                                          # (B, O)


def init_params(key):
    ks = jax.random.split(key, 12)
    lin = lambda k, shape: (0.05 * jax.random.normal(k, shape)).astype(jnp.float32)
    return {
        "wq": lin(ks[0], (H, H)), "bq": jnp.zeros((1, H), jnp.float32),
        "wk": lin(ks[1], (H, H)), "bk": jnp.zeros((1, H), jnp.float32),
        "wv": lin(ks[2], (H, H)), "bv": jnp.zeros((1, H), jnp.float32),
        "wo": lin(ks[3], (H, H)), "bo": jnp.zeros((1, H), jnp.float32),
        "ln1_g": jnp.ones((1, H), jnp.float32), "ln1_b": jnp.zeros((1, H), jnp.float32),
        "w1": lin(ks[4], (H, F)), "b1": jnp.zeros((1, F), jnp.float32),
        "w2": lin(ks[5], (F, H)), "b2": jnp.zeros((1, H), jnp.float32),
        "ln2_g": jnp.ones((1, H), jnp.float32), "ln2_b": jnp.zeros((1, H), jnp.float32),
        "wh": lin(ks[6], (H, O)), "bh": jnp.zeros((1, O), jnp.float32),
        # glue-level embedding tables
        "tok_emb": lin(ks[7], (V, H)),
        "pos_emb": lin(ks[8], (S, H)),
    }


def reference_forward(x_emb, att_mask, p):
    """Plain-JAX reference mirroring the stand-in encoder math (per-example, vmapped)."""
    def one(x, m):
        q = x @ p["wq"] + p["bq"]
        k = x @ p["wk"] + p["bk"]
        v = x @ p["wv"] + p["bv"]
        s = (q @ k.T) * (1.0 / (H ** 0.5))
        s = jnp.where(m[None, :] > 0.5, s, -1e9)
        a = jax.nn.softmax(s, axis=-1) @ v
        a = a @ p["wo"] + p["bo"]
        h = _layernorm(x + a, p["ln1_g"], p["ln1_b"])
        ff = jax.nn.gelu(h @ p["w1"] + p["b1"], approximate=True) @ p["w2"] + p["b2"]
        embs = _layernorm(h + ff, p["ln2_g"], p["ln2_b"])
        pooled = jnp.sum(embs * m[:, None], axis=0) / jnp.sum(m)
        return pooled @ p["wh"] + p["bh"][0]
    return jax.vmap(one)(x_emb, att_mask.astype(jnp.float32))


if __name__ == "__main__":
    key = jax.random.PRNGKey(0)
    k_param, k_ids = jax.random.split(key)
    params = init_params(k_param)
    packed = pack_params(params)

    # txt_tok: input_ids + attention_mask (second example has 3 padding tokens)
    input_ids = jax.random.randint(k_ids, (B, S), 0, V, dtype=jnp.int32)
    attention_mask = jnp.array(
        [[1, 1, 1, 1, 1, 1, 1, 1],
         [1, 1, 1, 1, 1, 0, 0, 0]], dtype=jnp.int32)

    # TODO(synk): embedding-table gather (and the real pretrained BERT stack) stays in
    # plain JAX; only the encoder hot path + pooling + clip_head run in the kernel.
    x_emb = (params["tok_emb"][input_ids] + params["pos_emb"][None, :, :]).astype(jnp.float32)

    out = text_model_forward(x_emb, attention_mask, packed)
    out = jax.block_until_ready(out)

    ref = reference_forward(x_emb, attention_mask, params)
    assert out.shape == (B, O), out.shape
    err = float(jnp.max(jnp.abs(out - ref)))
    assert jnp.allclose(out, ref, atol=1e-4, rtol=1e-4), err

    print("KERNEL_OK")
</pallas_src>

<mosaic_0001>
module attributes {stable_mosaic.version = 11 : i64} {
  func.func @text_model_kernel(%arg0: memref<16x32xf32, #tpu.memory_space<vmem>>, %arg1: memref<2x8xf32, #tpu.memory_space<vmem>>, %arg2: memref<32x96xf32, #tpu.memory_space<vmem>>, %arg3: memref<32x32xf32, #tpu.memory_space<vmem>>, %arg4: memref<32x64xf32, #tpu.memory_space<vmem>>, %arg5: memref<64x32xf32, #tpu.memory_space<vmem>>, %arg6: memref<32x128xf32, #tpu.memory_space<vmem>>, %arg7: memref<9x128xf32, #tpu.memory_space<vmem>>, %arg8: memref<2x128xf32, #tpu.memory_space<vmem>>) attributes {dimension_semantics = [], scalar_prefetch = 0 : i64, scratch_operands = 0 : i64, tpu.core_type = #tpu.core_type<tc>} {
    %c0 = arith.constant 0 : index
    %c0_0 = arith.constant 0 : index
    %0 = vector.load %arg0[%c0, %c0_0] : memref<16x32xf32, #tpu.memory_space<vmem>>, vector<16x32xf32>
    %c0_1 = arith.constant 0 : index
    %c0_2 = arith.constant 0 : index
    %1 = vector.load %arg1[%c0_1, %c0_2] : memref<2x8xf32, #tpu.memory_space<vmem>>, vector<2x8xf32>
    %c0_3 = arith.constant 0 : index
    %c0_4 = arith.constant 0 : index
    %2 = vector.load %arg7[%c0_3, %c0_4] : memref<9x128xf32, #tpu.memory_space<vmem>>, vector<9x128xf32>
    %3 = vector.extract_strided_slice %2 {offsets = [0, 0], sizes = [1, 96], strides = [1, 1]} : vector<9x128xf32> to vector<1x96xf32>
    %4 = vector.extract_strided_slice %2 {offsets = [1, 0], sizes = [1, 32], strides = [1, 1]} : vector<9x128xf32> to vector<1x32xf32>
    %5 = vector.extract_strided_slice %2 {offsets = [2, 0], sizes = [1, 32], strides = [1, 1]} : vector<9x128xf32> to vector<1x32xf32>
    %6 = vector.extract_strided_slice %2 {offsets = [3, 0], sizes = [1, 32], strides = [1, 1]} : vector<9x128xf32> to vector<1x32xf32>
    %7 = vector.extract_strided_slice %2 {offsets = [4, 0], sizes = [1, 64], strides = [1, 1]} : vector<9x128xf32> to vector<1x64xf32>
    %8 = vector.extract_strided_slice %2 {offsets = [5, 0], sizes = [1, 32], strides = [1, 1]} : vector<9x128xf32> to vector<1x32xf32>
    %9 = vector.extract_strided_slice %2 {offsets = [6, 0], sizes = [1, 32], strides = [1, 1]} : vector<9x128xf32> to vector<1x32xf32>
    %10 = vector.extract_strided_slice %2 {offsets = [7, 0], sizes = [1, 32], strides = [1, 1]} : vector<9x128xf32> to vector<1x32xf32>
    %11 = vector.extract_strided_slice %2 {offsets = [8, 0], sizes = [1, 128], strides = [1, 1]} : vector<9x128xf32> to vector<1x128xf32>
    %c0_5 = arith.constant 0 : index
    %c0_6 = arith.constant 0 : index
    %12 = vector.load %arg2[%c0_5, %c0_6] : memref<32x96xf32, #tpu.memory_space<vmem>>, vector<32x96xf32>
    %cst = arith.constant dense<0.000000e+00> : vector<16x96xf32>
    %13 = tpu.matmul %0, %12, %cst {dimension_numbers = #tpu.dot_dimension_numbers<[1], [0], [0], [1], [0, 0, 1, 1], [], []>} : vector<16x32xf32>, vector<32x96xf32>, vector<16x96xf32> -> vector<16x96xf32>
    %14 = vector.broadcast %3 : vector<1x96xf32> to vector<16x96xf32>
    %15 = arith.addf %13, %14 : vector<16x96xf32>
    %16 = vector.extract_strided_slice %15 {offsets = [0, 0], sizes = [16, 32], strides = [1, 1]} : vector<16x96xf32> to vector<16x32xf32>
    %17 = vector.shape_cast %16 : vector<16x32xf32> to vector<2x8x32xf32>
    %18 = vector.extract_strided_slice %15 {offsets = [0, 32], sizes = [16, 32], strides = [1, 1]} : vector<16x96xf32> to vector<16x32xf32>
    %19 = vector.shape_cast %18 : vector<16x32xf32> to vector<2x8x32xf32>
    %20 = vector.extract_strided_slice %15 {offsets = [0, 64], sizes = [16, 32], strides = [1, 1]} : vector<16x96xf32> to vector<16x32xf32>
    %21 = vector.shape_cast %20 : vector<16x32xf32> to vector<2x8x32xf32>
    "tpu.trace_start"() <{level = 10 : i32, message = "bqd,bkd->bqk"}> : () -> ()
    %cst_7 = arith.constant dense<0.000000e+00> : vector<2x8x8xf32>
    %22 = tpu.matmul %17, %19, %cst_7 {dimension_numbers = #tpu.dot_dimension_numbers<[2], [2], [1], [1], [0, 0, 0, 1, 1, 1], [0], [0]>} : vector<2x8x32xf32>, vector<2x8x32xf32>, vector<2x8x8xf32> -> vector<2x8x8xf32>
    "tpu.trace_stop"() : () -> ()
    %23 = vector.shape_cast %1 : vector<2x8xf32> to vector<2x1x8xf32>
    %cst_8 = arith.constant 5.000000e-01 : f32
    %24 = vector.broadcast %cst_8 : f32 to vector<2x1x8xf32>
    %25 = arith.cmpf ogt, %23, %24 : vector<2x1x8xf32>
    %cst_9 = arith.constant -1.000000e+09 : f32
    %26 = vector.shape_cast %25 : vector<2x1x8xi1> to vector<2x1x8xi1>
    %27 = vector.broadcast %26 : vector<2x1x8xi1> to vector<2x8x8xi1>
    %28 = vector.broadcast %cst_9 : f32 to vector<2x8x8xf32>
    %29 = arith.select %27, %22, %28 : vector<2x8x8xi1>, vector<2x8x8xf32>
    %cst_10 = arith.constant dense<0xFF800000> : vector<2x8xf32>
    %30 = vector.multi_reduction <maximumf>, %29, %cst_10 [2] : vector<2x8x8xf32> to vector<2x8xf32>
    %cst_11 = arith.constant 0xFF800000 : f32
    %31 = vector.broadcast %cst_11 : f32 to vector<2x8xf32>
    %32 = arith.maximumf %31, %30 : vector<2x8xf32>
    %33 = vector.shape_cast %32 : vector<2x8xf32> to vector<2x8x1xf32>
    %34 = vector.broadcast %33 : vector<2x8x1xf32> to vector<2x8x8xf32>
    %35 = arith.subf %29, %34 : vector<2x8x8xf32>
    %36 = math.exp %35 : vector<2x8x8xf32>
    %cst_12 = arith.constant dense<0.000000e+00> : vector<2x8xf32>
    %37 = vector.multi_reduction <add>, %36, %cst_12 [2] : vector<2x8x8xf32> to vector<2x8xf32>
    %38 = vector.shape_cast %37 : vector<2x8xf32> to vector<2x8x1xf32>
    %39 = vector.broadcast %38 : vector<2x8x1xf32> to vector<2x8x8xf32>
    %40 = arith.divf %36, %39 : vector<2x8x8xf32>
    "tpu.trace_start"() <{level = 10 : i32, message = "bqk,bkd->bqd"}> : () -> ()
    %cst_13 = arith.constant dense<0.000000e+00> : vector<2x8x32xf32>
    %41 = tpu.matmul %40, %21, %cst_13 {dimension_numbers = #tpu.dot_dimension_numbers<[2], [1], [1], [2], [0, 0, 0, 1, 1, 2], [0], [0]>} : vector<2x8x8xf32>, vector<2x8x32xf32>, vector<2x8x32xf32> -> vector<2x8x32xf32>
    "tpu.trace_stop"() : () -> ()
    %42 = vector.shape_cast %41 : vector<2x8x32xf32> to vector<16x32xf32>
    %c0_14 = arith.constant 0 : index
    %c0_15 = arith.constant 0 : index
    %43 = vector.load %arg3[%c0_14, %c0_15] : memref<32x32xf32, #tpu.memory_space<vmem>>, vector<32x32xf32>
    %cst_16 = arith.constant dense<0.000000e+00> : vector<16x32xf32>
    %44 = tpu.matmul %42, %43, %cst_16 {dimension_numbers = #tpu.dot_dimension_numbers<[1], [0], [0], [1], [0, 0, 1, 1], [], []>} : vector<16x32xf32>, vector<32x32xf32>, vector<16x32xf32> -> vector<16x32xf32>
    %45 = vector.broadcast %4 : vector<1x32xf32> to vector<16x32xf32>
    %46 = arith.addf %44, %45 : vector<16x32xf32>
    %47 = arith.addf %0, %46 : vector<16x32xf32>
    %cst_17 = arith.constant dense<0.000000e+00> : vector<16xf32>
    %48 = vector.multi_reduction <add>, %47, %cst_17 [1] : vector<16x32xf32> to vector<16xf32>
    %49 = vector.shape_cast %48 : vector<16xf32> to vector<16x1xf32>
    %cst_18 = arith.constant 3.200000e+01 : f32
    %50 = vector.broadcast %cst_18 : f32 to vector<16x1xf32>
    %51 = arith.divf %49, %50 : vector<16x1xf32>
    %52 = vector.broadcast %51 : vector<16x1xf32> to vector<16x32xf32>
    %53 = arith.subf %47, %52 : vector<16x32xf32>
    %54 = arith.mulf %53, %53 : vector<16x32xf32>
    %cst_19 = arith.constant dense<0.000000e+00> : vector<16xf32>
    %55 = vector.multi_reduction <add>, %54, %cst_19 [1] : vector<16x32xf32> to vector<16xf32>
    %56 = vector.shape_cast %55 : vector<16xf32> to vector<16x1xf32>
    %cst_20 = arith.constant 3.200000e+01 : f32
    %57 = vector.broadcast %cst_20 : f32 to vector<16x1xf32>
    %58 = arith.divf %56, %57 : vector<16x1xf32>
    %59 = vector.broadcast %51 : vector<16x1xf32> to vector<16x32xf32>
    %60 = arith.subf %47, %59 : vector<16x32xf32>
    %cst_21 = arith.constant 9.99999974E-6 : f32
    %61 = vector.broadcast %cst_21 : f32 to vector<16x1xf32>
    %62 = arith.addf %58, %61 : vector<16x1xf32>
    %63 = math.rsqrt %62 : vector<16x1xf32>
    %64 = vector.broadcast %63 : vector<16x1xf32> to vector<16x32xf32>
    %65 = arith.mulf %60, %64 : vector<16x32xf32>
    %66 = vector.broadcast %5 : vector<1x32xf32> to vector<16x32xf32>
    %67 = arith.mulf %65, %66 : vector<16x32xf32>
    %68 = vector.broadcast %6 : vector<1x32xf32> to vector<16x32xf32>
    %69 = arith.addf %67, %68 : vector<16x32xf32>
    %c0_22 = arith.constant 0 : index
    %c0_23 = arith.constant 0 : index
    %70 = vector.load %arg4[%c0_22, %c0_23] : memref<32x64xf32, #tpu.memory_space<vmem>>, vector<32x64xf32>
    %cst_24 = arith.constant dense<0.000000e+00> : vector<16x64xf32>
    %71 = tpu.matmul %69, %70, %cst_24 {dimension_numbers = #tpu.dot_dimension_numbers<[1], [0], [0], [1], [0, 0, 1, 1], [], []>} : vector<16x32xf32>, vector<32x64xf32>, vector<16x64xf32> -> vector<16x64xf32>
    %72 = vector.broadcast %7 : vector<1x64xf32> to vector<16x64xf32>
    %73 = arith.addf %71, %72 : vector<16x64xf32>
    %74 = arith.mulf %73, %73 : vector<16x64xf32>
    %75 = arith.mulf %73, %74 : vector<16x64xf32>
    %cst_25 = arith.constant 4.471500e-02 : f32
    %76 = vector.broadcast %cst_25 : f32 to vector<16x64xf32>
    %77 = arith.mulf %76, %75 : vector<16x64xf32>
    %78 = arith.addf %73, %77 : vector<16x64xf32>
    %cst_26 = arith.constant 0.797884583 : f32
    %79 = vector.broadcast %cst_26 : f32 to vector<16x64xf32>
    %80 = arith.mulf %79, %78 : vector<16x64xf32>
    %81 = math.tanh %80 : vector<16x64xf32>
    %cst_27 = arith.constant 1.000000e+00 : f32
    %82 = vector.broadcast %cst_27 : f32 to vector<16x64xf32>
    %83 = arith.addf %82, %81 : vector<16x64xf32>
    %cst_28 = arith.constant 5.000000e-01 : f32
    %84 = vector.broadcast %cst_28 : f32 to vector<16x64xf32>
    %85 = arith.mulf %84, %83 : vector<16x64xf32>
    %86 = arith.mulf %73, %85 : vector<16x64xf32>
    %c0_29 = arith.constant 0 : index
    %c0_30 = arith.constant 0 : index
    %87 = vector.load %arg5[%c0_29, %c0_30] : memref<64x32xf32, #tpu.memory_space<vmem>>, vector<64x32xf32>
    %cst_31 = arith.constant dense<0.000000e+00> : vector<16x32xf32>
    %88 = tpu.matmul %86, %87, %cst_31 {dimension_numbers = #tpu.dot_dimension_numbers<[1], [0], [0], [1], [0, 0, 1, 1], [], []>} : vector<16x64xf32>, vector<64x32xf32>, vector<16x32xf32> -> vector<16x32xf32>
    %89 = vector.broadcast %8 : vector<1x32xf32> to vector<16x32xf32>
    %90 = arith.addf %88, %89 : vector<16x32xf32>
    %91 = arith.addf %69, %90 : vector<16x32xf32>
    %cst_32 = arith.constant dense<0.000000e+00> : vector<16xf32>
    %92 = vector.multi_reduction <add>, %91, %cst_32 [1] : vector<16x32xf32> to vector<16xf32>
    %93 = vector.shape_cast %92 : vector<16xf32> to vector<16x1xf32>
    %cst_33 = arith.constant 3.200000e+01 : f32
    %94 = vector.broadcast %cst_33 : f32 to vector<16x1xf32>
    %95 = arith.divf %93, %94 : vector<16x1xf32>
    %96 = vector.broadcast %95 : vector<16x1xf32> to vector<16x32xf32>
    %97 = arith.subf %91, %96 : vector<16x32xf32>
    %98 = arith.mulf %97, %97 : vector<16x32xf32>
    %cst_34 = arith.constant dense<0.000000e+00> : vector<16xf32>
    %99 = vector.multi_reduction <add>, %98, %cst_34 [1] : vector<16x32xf32> to vector<16xf32>
    %100 = vector.shape_cast %99 : vector<16xf32> to vector<16x1xf32>
    %cst_35 = arith.constant 3.200000e+01 : f32
    %101 = vector.broadcast %cst_35 : f32 to vector<16x1xf32>
    %102 = arith.divf %100, %101 : vector<16x1xf32>
    %103 = vector.broadcast %95 : vector<16x1xf32> to vector<16x32xf32>
    %104 = arith.subf %91, %103 : vector<16x32xf32>
    %cst_36 = arith.constant 9.99999974E-6 : f32
    %105 = vector.broadcast %cst_36 : f32 to vector<16x1xf32>
    %106 = arith.addf %102, %105 : vector<16x1xf32>
    %107 = math.rsqrt %106 : vector<16x1xf32>
    %108 = vector.broadcast %107 : vector<16x1xf32> to vector<16x32xf32>
    %109 = arith.mulf %104, %108 : vector<16x32xf32>
    %110 = vector.broadcast %9 : vector<1x32xf32> to vector<16x32xf32>
    %111 = arith.mulf %109, %110 : vector<16x32xf32>
    %112 = vector.broadcast %10 : vector<1x32xf32> to vector<16x32xf32>
    %113 = arith.addf %111, %112 : vector<16x32xf32>
    %114 = vector.shape_cast %113 : vector<16x32xf32> to vector<2x8x32xf32>
    %115 = vector.shape_cast %1 : vector<2x8xf32> to vector<2x1x8xf32>
    "tpu.trace_start"() <{level = 10 : i32, message = "bqs,bsh->bqh"}> : () -> ()
    %cst_37 = arith.constant dense<0.000000e+00> : vector<2x1x32xf32>
    %116 = tpu.matmul %115, %114, %cst_37 {dimension_numbers = #tpu.dot_dimension_numbers<[2], [1], [1], [2], [0, 0, 0, 1, 1, 2], [0], [0]>} : vector<2x1x8xf32>, vector<2x8x32xf32>, vector<2x1x32xf32> -> vector<2x1x32xf32>
    "tpu.trace_stop"() : () -> ()
    %117 = vector.shape_cast %116 : vector<2x1x32xf32> to vector<2x32xf32>
    %cst_38 = arith.constant dense<0.000000e+00> : vector<2xf32>
    %118 = vector.multi_reduction <add>, %1, %cst_38 [1] : vector<2x8xf32> to vector<2xf32>
    %119 = vector.shape_cast %118 : vector<2xf32> to vector<2x1xf32>
    %120 = tpu.reciprocal %119 : vector<2x1xf32> -> vector<2x1xf32>
    %121 = vector.broadcast %120 : vector<2x1xf32> to vector<2x32xf32>
    %122 = arith.mulf %117, %121 : vector<2x32xf32>
    %c0_39 = arith.constant 0 : index
    %c0_40 = arith.constant 0 : index
    %123 = vector.load %arg6[%c0_39, %c0_40] : memref<32x128xf32, #tpu.memory_space<vmem>>, vector<32x128xf32>
    %cst_41 = arith.constant dense<0.000000e+00> : vector<2x128xf32>
    %124 = tpu.matmul %122, %123, %cst_41 {dimension_numbers = #tpu.dot_dimension_numbers<[1], [0], [0], [1], [0, 0, 1, 1], [], []>} : vector<2x32xf32>, vector<32x128xf32>, vector<2x128xf32> -> vector<2x128xf32>
    %125 = vector.broadcast %11 : vector<1x128xf32> to vector<2x128xf32>
    %126 = arith.addf %124, %125 : vector<2x128xf32>
    %c0_42 = arith.constant 0 : index
    %c0_43 = arith.constant 0 : index
    %127 = vector.load %arg8[%c0_42, %c0_43] : memref<2x128xf32, #tpu.memory_space<vmem>>, vector<2x128xf32>
    tpu.vector_store %arg8[%c0_42, %c0_43], %126 {strides = array<i32>} : memref<2x128xf32, #tpu.memory_space<vmem>>, vector<2x128xf32>,
    return
  }
}

</mosaic_0001>

<bundles_post_ra>
// kernel: tpu_custom_call.1
= control target key start
LH: loop header
LB: loop body
LE: loop exit
PB: predicated region body
PF: predicated region fallthrough
CT: control target
= control target key end

     0   :  { %13 = vsyncpa [#allocation3], 0  ;;  %s1709_s0 = inlined_call_operand.hbm [shape: f32[16,32], index: 0, kind: input, shape index: {}]   ;;  %s1710_s1 = inlined_call_operand.hbm [shape: f32[2,8], index: 1, kind: input, shape index: {}]   ;;  %s1711_s2 = inlined_call_operand.vmem [shape: f32[32,96], index: 2, kind: input, shape index: {}]   ;;  %s1712_s3 = inlined_call_operand.vmem [shape: f32[32,32], index: 3, kind: input, shape index: {}]   ;;  %s1713_s4 = inlined_call_operand.vmem [shape: f32[32,64], index: 4, kind: input, shape index: {}]   ;;  %s1714_s5 = inlined_call_operand.vmem [shape: f32[64,32], index: 5, kind: input, shape index: {}]   ;;  %s1715_s6 = inlined_call_operand.hbm [shape: f32[32,128], index: 6, kind: input, shape index: {}]   ;;  %s1716_s7 = inlined_call_operand.hbm [shape: f32[9,128], index: 7, kind: input, shape index: {}]   ;;  %s1717_s8 = inlined_call_operand.hbm [shape: f32[2,128], index: 8, kind: output, shape index: {}]  }
   0x1   :  { %14 = vsyncpa [#allocation6], 0 }
   0x2   :  { %15 = vsyncpa [#allocation9], 0 }
   0x3   :  { %16 = vsyncpa [#allocation4], 0  ;;  %s1476_s27 = smov [#allocation5]   ;;  %s1477_s29 = smov [#allocation2]  }
   0x4   :  { %s35_s28 = sshll.u32 %s1476_s27, 4  ;;  %s22_s30 = sshll.u32 %s1477_s29, 4  ;;  %s36_s28 = int_to_ptr.vmem [resolvable:$true] %s35_s28  ;;  %s23_s30 = int_to_ptr.vmem [resolvable:$true] %s22_s30 }
   0x5   :  { %s1376_s9 = scalar_lea.vmem %s36_s28, 32  ;;  %p1381_p1 = scmp.lt.s32.totalorder %s36_s28, %s36_s28 }
   0x6   :  { %p1377_p0 = scmp.ne.s32.totalorder %s36_s28, %s1376_s9  ;;  %p1382_p2 = scmp.lt.s32.totalorder %s1376_s9, %s1376_s9 }
   0x8   :  { %p1383_p3 = por %p1382_p2, %p1381_p1 }
   0xa   :  { %p1384_p4 = pnand %p1383_p3, %p1377_p0 }
   0xc   :  { %1387 = shalt.err (!%p1384_p4)
}
   0xd   :  { %38 = dma.hbm_to_vmem [thread:$0]  %s1710_s1, 32, %s36_s28, [#allocation6]  }
   0xe   :  { %s1396_s12 = scalar_lea.vmem %s23_s30, 256  ;;  %p1401_p6 = scmp.lt.s32.totalorder %s23_s30, %s23_s30 }
   0xf   :  { %p1397_p5 = scmp.ne.s32.totalorder %s23_s30, %s1396_s12  ;;  %p1402_p7 = scmp.lt.s32.totalorder %s1396_s12, %s1396_s12 }
  0x11   :  { %p1403_p8 = por %p1402_p7, %p1401_p6 }
  0x13   :  { %p1404_p9 = pnand %p1403_p8, %p1397_p5 }
  0x15   :  { %1407 = shalt.err (!%p1404_p9)
}
  0x16   :  { %s1478_s13 = smov 128   ;;  %s1479_s14 = smov 8  }
  0x17   :  { %28 = dma.hbm_to_vmem [thread:$0]  %s1709_s0, 256, %s23_s30, [#allocation3], %s1478_s13, %s1478_s13, %s1479_s14  }
  0x18   :  { %s1480_s17 = smov [#allocation7]   ;;  %s1481_s19 = smov [#allocation8]  }
  0x19   :  { %s52_s18 = sshll.u32 %s1480_s17, 4  ;;  %s64_s20 = sshll.u32 %s1481_s19, 4  ;;  %s53_s18 = int_to_ptr.vmem [resolvable:$true] %s52_s18  ;;  %s65_s20 = int_to_ptr.vmem [resolvable:$true] %s64_s20 }
  0x1a   :  { %s1416_s1 = scalar_lea.vmem %s53_s18, 512  ;;  %p1421_p11 = scmp.lt.s32.totalorder %s53_s18, %s53_s18 }
  0x1b   :  { %p1417_p10 = scmp.ne.s32.totalorder %s53_s18, %s1416_s1  ;;  %p1422_p12 = scmp.lt.s32.totalorder %s1416_s1, %s1416_s1 }
  0x1d   :  { %p1423_p13 = por %p1422_p12, %p1421_p11 }
  0x1f   :  { %p1424_p0 = pnand %p1423_p13, %p1417_p10 }
  0x21   :  { %1427 = shalt.err (!%p1424_p0)
}
  0x22   :  { %58 = dma.hbm_to_vmem [thread:$0]  %s1715_s6, 512, %s53_s18, [#allocation6], %s1478_s13, %s1478_s13, %s1479_s14  }
  0x23   :  { %s1436_s23 = scalar_lea.vmem %s65_s20, 256  ;;  %p1441_p2 = scmp.lt.s32.totalorder %s65_s20, %s65_s20 }
  0x24   :  { %p1437_p1 = scmp.ne.s32.totalorder %s65_s20, %s1436_s23  ;;  %p1442_p3 = scmp.lt.s32.totalorder %s1436_s23, %s1436_s23 }
  0x26   :  { %p1443_p4 = por %p1442_p3, %p1441_p2 }
  0x28   :  { %p1444_p5 = pnand %p1443_p4, %p1437_p1 }
  0x2a   :  { %1447 = shalt.err (!%p1444_p5)
}
  0x2b   :  { %70 = dma.hbm_to_vmem [thread:$0]  %s1716_s7, 256, %s65_s20, [#allocation9], %s1478_s13, %s1478_s13, %s1479_s14  }
  0x2c   :  { %1468 = dma.done.wait [#allocation3], 256  }
  0x2d   :  { %1469 = vsyncadd [#allocation3], 4294967040 }
  0x2e   :  { %1470 = dma.done.wait [#allocation6], 544  }
  0x2f   :  { %1471 = vsyncadd [#allocation6], 4294966752 }
  0x30   :  { %1472 = dma.done.wait [#allocation9], 256  }
  0x31   :  { %1473 = vsyncadd [#allocation9], 4294967040  ;;  %vm96_vm0 = vcmask 261120   ;;  %v91_v0 = vld [vmem:[%s1711_s2 + $0x18] sm:$0xff]  ;;  %v90_v1 = vld [vmem:[%s1711_s2 + $0x10] sm:$0xff]  ;;  %v1482_v6 = vmov 0.0   ;;  %v92_v7 = vlaneseq }
  0x32   :  { %1240 = vmatprep.subr.mxu0 %v91_v0  ;;  %v1552_v2 = vld [vmem:[#allocation2] sm:$0xff]  ;;  %v89_v3 = vld [vmem:[%s1711_s2 + $0x8] sm:$0xff]  ;;  %1251 = vmatprep.subr.mxu1 %v1482_v6  ;;  %vm1483_vm1 = vmmov 0   ;;  %v1575_v10 = vld [vmem:[#allocation8] sm:$0xff]  ;;  %v1485_v18 = vmov 1966171168  }
  0x33   :  { %1241 = vmatpush3.msra.mxu0 %v91_v0  ;;  %1248 = vmatprep.mubr.msk.f32.mxu0 %vm96_vm0, %v1552_v2  ;;  %v88_v4 = vld [vmem:[%s1711_s2] sm:$0xff]  ;;  %v1562_v5 = vld [vmem:[#allocation2 + $0x8] sm:$0xff]  ;;  %v1568_v8 = vshrl.u32 %v92_v7, 7  ;;  %s1484_s2 = smov 96   ;;  %v334_v19 = vunpack.c.l.s4 %v1485_v18  ;;  %v1589_v22 = vld [vmem:[#allocation5] sm:$0x3] }
  0x34   :  { %1242 = vmatprep.subr.mxu0 %v90_v1  ;;  %1253 = vmatprep.mubr.msk.f32.mxu1 %vm1483_vm1, %v1482_v6  ;;  %v1486_v27 = vmov 0   ;;  %vm373_vm5 = vcmask 64512   ;;  %s1487_s9 = smov 64   ;;  %v551_v51 = vld [vmem:[%s1712_s3 + $0x18] sm:$0xff]  ;;  %v550_v57 = vld [vmem:[%s1712_s3 + $0x10] sm:$0xff]  ;;  %v549_v60 = vld [vmem:[%s1712_s3 + $0x8] sm:$0xff] }
  0x35   :  { %1243 = vmatpush3.msra.mxu0 %v90_v1  ;;  %v94_v9 = vsub.s32 0, %v1568_v8  ;;  %v335_v20 = vunpack.c.0.s8 %v334_v19  ;;  %v548_v61 = vld [vmem:[%s1712_s3] sm:$0xff]  ;;  %vm797_vm7 = vcmask 523264   ;;  %vm1063_vm8 = vcmask 58368  }
  0x36   :  { %1244 = vmatprep.subr.mxu0 %v89_v3  ;;  %vm1085_vm9 = vcmask 1041409  }
  0x37   :  { %1245 = vmatpush3.msra.mxu0 %v89_v3  ;;  %v95_v12 = vrot.slane %v1575_v10, %v94_v9  ;;  %v338_v21 = vsub.s32 %v335_v20, %v1568_v8  ;;  %v554_v3 = vsub.s32 1, %v1568_v8 }
  0x38   :  { %1246 = vmatprep.subr.mxu0 %v88_v4 }
  0x39   :  { %1247 = vmatpush3.msra.mxu0 %v88_v4  ;;  %v339_v23 = vrot.slane %v1589_v22, %v338_v21  ;;  %v555_v4 = vrot.slane %v1575_v10, %v554_v3 }
  0x3a   :  { %1249 = vmatmul.mubr.msk.f32.vlgmr.msra.gmra.mxu0 %vm96_vm0, %v1562_v5  ;;  %1261 = vmatprep.subr.mxu0 %v1482_v6 }
  0x3b   :  { %1263 = vmatprep.mubr.msk.f32.mxu0 %vm1483_vm1, %v1482_v6  ;;  %v1592_v24 = vrot.slane %v339_v23, %v338_v21  ;;  %v340_v25 = vcombine.high %v339_v23, %v339_v23 }
  0x3d   :  { %vm357_vm2 = vcmp.gt.f32.partialorder %v1592_v24, 0.5  ;;  %v1595_v26 = vrot.slane %v340_v25, %v338_v21 }
  0x3e   :  { %v359_v28 = vsel %vm357_vm2, 1, %v1486_v27 }
  0x3f   :  { %vm358_vm3 = vcmp.gt.f32.partialorder %v1595_v26, 0.5  ;;  %v364_v29 = vrot.slane %v359_v28, %v94_v9 }
  0x40   :  { %v360_v30 = vsel %vm358_vm3, 1, %v1486_v27 }
  0x41   :  { %vm369_vm4 = vcmp.eq.s32.totalorder %v364_v29, 1  ;;  %v368_v31 = vrot.slane %v360_v30, %v94_v9  ;;  %v680_v29 = vld [vmem:[%s1713_s4 + $0x10] sm:$0xff]  ;;  %v679_v30 = vld [vmem:[%s1713_s4 + $0x8] sm:$0xff] }
  0x43   :  { %vm370_vm6 = vcmp.eq.s32.totalorder %v368_v31, 1  ;;  %v678_v31 = vld [vmem:[%s1713_s4] sm:$0xff] }
  0xfa   :  { %v1250_v11 = vpop.f32.mrf.mxu0 }
  0xfb   :  { %v175_v15 = vadd.f32 %v1250_v11, %v95_v12 }
  0xfc   :  { %v169_v13 = vpop.f32.mrf.mxu0 }
  0xfd   :  { %v170_v14 = vadd.f32 %v169_v13, %v95_v12 }
  0xff   :  { %179 = vrot.lane.b32.xlu0 %v170_v14, %s1484_s2 }
 0x103   :  { %256 = vrot.lane.b32.xlu0 %v175_v15, %s1484_s2 }
 0x171   :  { %v180_v16 = vpop.permute.xlu0 %179 }
 0x172   :  { %1252 = vmatpush3.xpose.msk.msra.mxu1 %vm96_vm0, %v180_v16 }
 0x173   :  { %1256 = vmatprep.subr.mxu1 %v1482_v6 }
 0x175   :  { %1254 = vmatmul.mubr.msk.f32.vlgmr.msra.gmra.mxu1 %vm96_vm0, %v170_v14  ;;  %v257_v17 = vpop.permute.xlu0 %256 }
 0x176   :  { %1257 = vmatpush3.xpose.msk.msra.mxu1 %vm96_vm0, %v257_v17  ;;  %1258 = vmatprep.mubr.msk.f32.mxu1 %vm1483_vm1, %v1482_v6 }
 0x177   :  { %1266 = vmatprep.subr.mxu1 %v1482_v6 }
 0x179   :  { %1259 = vmatmul.mubr.msk.f32.vlgmr.msra.gmra.mxu1 %vm96_vm0, %v175_v15 }
 0x17a   :  { %1268 = vmatprep.mubr.msk.f32.mxu1 %vm1483_vm1, %v1482_v6 }
 0x235   :  { %v251_v32 = vpop.f32.mrf.mxu1 }
 0x236   :  { %v371_v33 = vsel %vm369_vm4, %v251_v32, -1e+09 }
 0x237   :  { %v1255_v34 = vpop.f32.mrf.mxu1  ;;  %v374_v35 = vsel %vm373_vm5, %v371_v33, -inf }
 0x238   :  { %375 = vmax.xlane.f32.xlu1 %v374_v35 }
 0x239   :  { %v328_v36 = vpop.f32.mrf.mxu1 }
 0x23a   :  { %v372_v37 = vsel %vm370_vm6, %v328_v36, -1e+09 }
 0x23b   :  { %v1260_v38 = vpop.f32.mrf.mxu1  ;;  %v377_v39 = vsel %vm373_vm5, %v372_v37, -inf }
 0x23c   :  { %378 = vmax.xlane.f32.xlu1 %v377_v39  ;;  %v668_v38 = vsub.s32 2, %v1568_v8  ;;  %v674_v39 = vsub.s32 3, %v1568_v8 }
 0x24d   :  { %396 = vrot.lane.b32.xlu1 %v170_v14, %s1487_s9 }
 0x2c1   :  { %v376_v40 = vpop.xlane.xlu1 %375 }
 0x2c2   :  { %v380_v41 = vsub.f32 %v371_v33, %v376_v40  ;;  %v669_v40 = vrot.slane %v1575_v10, %v668_v38 }
 0x2c4   :  { %v382_v42 = vmul.f32 1.442695, %v380_v41 }
 0x2c5   :  { %v379_v43 = vpop.xlane.xlu1 %378 }
 0x2c6   :  { %1346 = vpow2.f32 %v382_v42  ;;  %v381_v44 = vsub.f32 %v372_v37, %v379_v43  ;;  %v675_v43 = vrot.slane %v1575_v10, %v674_v39 }
 0x2c8   :  { %v384_v45 = vmul.f32 1.442695, %v381_v44 }
 0x2c9   :  { %v397_v46 = vpop.permute.xlu1 %396 }
 0x2ca   :  { %1348 = vpow2.f32 %v384_v45  ;;  %1262 = vmatpush3.msra.mxu0 %v397_v46 }
 0x2cb   :  { %1271 = vmatprep.subr.mxu0 %v551_v51 }
 0x2d3   :  { %v1347_v47 = vpop.eup %1346 }
 0x2d4   :  { %v386_v48 = vsel %vm373_vm5, %v1347_v47, 0.0 }
 0x2d5   :  { %387 = vadd.xlane.f32.xlu0 %v386_v48 }
 0x2d7   :  { %v1349_v49 = vpop.eup %1348 }
 0x2d8   :  { %v389_v50 = vsel %vm373_vm5, %v1349_v49, 0.0 }
 0x2d9   :  { %390 = vadd.xlane.f32.xlu1 %v389_v50  ;;  %v792_v50 = vld [vmem:[%s1714_s5 + $0x38] sm:$0xff] }
 0x2ea   :  { %472 = vrot.lane.b32.xlu1 %v175_v15, %s1487_s9 }
 0x35e   :  { %v388_v52 = vpop.xlane.xlu0 %387 }
 0x35f   :  { %1350 = vrcp.f32 %v388_v52  ;;  %v790_v52 = vld [vmem:[%s1714_s5 + $0x28] sm:$0xff] }
 0x362   :  { %v391_v53 = vpop.xlane.xlu1 %390 }
 0x363   :  { %1352 = vrcp.f32 %v391_v53  ;;  %v789_v53 = vld [vmem:[%s1714_s5 + $0x20] sm:$0xff] }
 0x366   :  { %v473_v54 = vpop.permute.xlu1 %472 }
 0x367   :  { %1267 = vmatpush3.msra.mxu1 %v473_v54  ;;  %v788_v54 = vld [vmem:[%s1714_s5 + $0x18] sm:$0xff] }
 0x36c   :  { %v1351_v55 = vpop.eup %1350 }
 0x36d   :  { %v393_v56 = vmul.f32 %v1351_v55, %v1347_v47  ;;  %v787_v55 = vld [vmem:[%s1714_s5 + $0x10] sm:$0xff] }
 0x36f   :  { %1264 = vmatmul.mubr.msk.f32.vlgmr.msra.gmra.mxu0 %vm373_vm5, %v393_v56  ;;  %v786_v56 = vld [vmem:[%s1714_s5 + $0x8] sm:$0xff] }
 0x370   :  { %v1353_v58 = vpop.eup %1352  ;;  %1272 = vmatpush3.msra.mxu0 %v551_v51  ;;  %v791_v51 = vld [vmem:[%s1714_s5 + $0x30] sm:$0xff] }
 0x371   :  { %v395_v59 = vmul.f32 %v1353_v58, %v1349_v49  ;;  %1273 = vmatprep.subr.mxu0 %v550_v57  ;;  %v684_v58 = vsub.s32 4, %v1568_v8 }
 0x372   :  { %1274 = vmatpush3.msra.mxu0 %v550_v57  ;;  %v785_v57 = vld [vmem:[%s1714_s5] sm:$0xff]  ;;  %s1488_s5 = smov [#allocation10]  }
 0x373   :  { %1269 = vmatmul.mubr.msk.f32.vlgmr.msra.gmra.mxu1 %vm373_vm5, %v395_v59  ;;  %1275 = vmatprep.subr.mxu0 %v549_v60  ;;  %v685_v59 = vrot.slane %v1575_v10, %v684_v58  ;;  %s1166_s13 = sshll.u32 %s1488_s5, 4  ;;  %s1167_s13 = int_to_ptr.vmem [resolvable:$true] %s1166_s13 }
 0x374   :  { %1276 = vmatpush3.msra.mxu0 %v549_v60  ;;  %s1448_s14 = scalar_lea.vmem %s1167_s13, 32  ;;  %p1453_p7 = scmp.lt.s32.totalorder %s1167_s13, %s1167_s13 }
 0x375   :  { %1277 = vmatprep.subr.mxu0 %v548_v61  ;;  %p1449_p6 = scmp.ne.s32.totalorder %s1167_s13, %s1448_s14  ;;  %p1454_p8 = scmp.lt.s32.totalorder %s1448_s14, %s1448_s14 }
 0x376   :  { %1278 = vmatpush3.msra.mxu0 %v548_v61 }
 0x377   :  { %1293 = vmatprep.subr.mxu0 %v792_v50  ;;  %p1455_p9 = por %p1454_p8, %p1453_p7 }
 0x379   :  { %p1456_p10 = pnand %p1455_p9, %p1449_p6 }
 0x42f   :  { %v468_v62 = vpop.f32.mrf.mxu0 }
 0x430   :  { %1279 = vmatprep.mubr.msk.f32.mxu0 %vm96_vm0, %v468_v62 }
 0x431   :  { %v1265_v63 = vpop.f32.mrf.mxu0 }
 0x433   :  { %v544_v0 = vpop.f32.mrf.mxu1 }
 0x434   :  { %1280 = vmatmul.mubr.msk.f32.vlgmr.msra.gmra.mxu0 %vm96_vm0, %v544_v0 }
 0x435   :  { %v1270_v1 = vpop.f32.mrf.mxu1  ;;  %1294 = vmatpush3.msra.mxu0 %v792_v50 }
 0x436   :  { %1295 = vmatprep.subr.mxu0 %v791_v51 }
 0x437   :  { %1296 = vmatpush3.msra.mxu0 %v791_v51  ;;  %v909_v51 = vsub.s32 6, %v1568_v8 }
 0x438   :  { %1297 = vmatprep.subr.mxu0 %v790_v52 }
 0x439   :  { %1298 = vmatpush3.msra.mxu0 %v790_v52  ;;  %v915_v52 = vsub.s32 7, %v1568_v8 }
 0x43a   :  { %1299 = vmatprep.subr.mxu0 %v789_v53 }
 0x43b   :  { %1300 = vmatpush3.msra.mxu0 %v789_v53  ;;  %v910_v53 = vrot.slane %v1575_v10, %v909_v51 }
 0x43c   :  { %1301 = vmatprep.subr.mxu0 %v788_v54 }
 0x43d   :  { %1302 = vmatpush3.msra.mxu0 %v788_v54 }
 0x43e   :  { %1303 = vmatprep.subr.mxu0 %v787_v55 }
 0x43f   :  { %1304 = vmatpush3.msra.mxu0 %v787_v55 }
 0x440   :  { %1305 = vmatprep.subr.mxu0 %v786_v56 }
 0x441   :  { %1306 = vmatpush3.msra.mxu0 %v786_v56  ;;  %v916_v56 = vrot.slane %v1575_v10, %v915_v52 }
 0x442   :  { %1307 = vmatprep.subr.mxu0 %v785_v57 }
 0x443   :  { %1308 = vmatpush3.msra.mxu0 %v785_v57 }
 0x4f4   :  { %v1281_v7 = vpop.f32.mrf.mxu0 }
 0x4f5   :  { %v634_v9 = vadd.f32 %v1281_v7, %v555_v4 }
 0x4f6   :  { %v628_v11 = vpop.f32.mrf.mxu0 }
 0x4f7   :  { %v629_v12 = vadd.f32 %v628_v11, %v555_v4  ;;  %v638_v13 = vadd.f32 %v634_v9, %v1562_v5 }
 0x4f9   :  { %v642_v14 = vsel %vm96_vm0, %v638_v13, 0.0  ;;  %v637_v15 = vadd.f32 %v629_v12, %v1552_v2  ;;  %v681_v2 = vld [vmem:[%s1713_s4 + $0x18] sm:$0xff] }
 0x4fa   :  { %643 = vadd.xlane.f32.xlu0 %v642_v14  ;;  %1282 = vmatprep.subr.mxu1 %v681_v2 }
 0x4fb   :  { %v639_v16 = vsel %vm96_vm0, %v637_v15, 0.0  ;;  %1283 = vmatpush3.msra.mxu1 %v681_v2 }
 0x4fc   :  { %640 = vadd.xlane.f32.xlu1 %v639_v16  ;;  %1284 = vmatprep.subr.mxu1 %v680_v29 }
 0x4fd   :  { %1285 = vmatpush3.msra.mxu1 %v680_v29 }
 0x4fe   :  { %1286 = vmatprep.subr.mxu1 %v679_v30 }
 0x4ff   :  { %1287 = vmatpush3.msra.mxu1 %v679_v30 }
 0x500   :  { %1288 = vmatprep.subr.mxu1 %v678_v31 }
 0x501   :  { %1289 = vmatpush3.msra.mxu1 %v678_v31 }
 0x502   :  { %1312 = vmatprep.subr.mxu1 %v1482_v6 }
 0x583   :  { %v644_v17 = vpop.xlane.xlu0 %643 }
 0x584   :  { %v647_v18 = vmul.f32 0.03125, %v644_v17 }
 0x585   :  { %v641_v19 = vpop.xlane.xlu1 %640 }
 0x586   :  { %v646_v20 = vmul.f32 0.03125, %v641_v19  ;;  %v649_v21 = vsub.f32 %v638_v13, %v647_v18 }
 0x588   :  { %v648_v23 = vsub.f32 %v637_v15, %v646_v20  ;;  %v651_v28 = vmul.f32 %v649_v21, %v649_v21 }
 0x58a   :  { %v650_v25 = vmul.f32 %v648_v23, %v648_v23  ;;  %v655_v5 = vsel %vm96_vm0, %v651_v28, 0.0 }
 0x58c   :  { %v652_v27 = vsel %vm96_vm0, %v650_v25, 0.0  ;;  %v795_v25 = vsub.s32 5, %v1568_v8  ;;  %v1077_v8 = vld [vmem:[#allocation7 + $0x18] sm:$0xff] }
 0x58d   :  { %653 = vadd.xlane.f32.xlu0 %v652_v27 }
 0x58e   :  { %v796_v27 = vrot.slane %v1575_v10, %v795_v25  ;;  %v1076_v10 = vld [vmem:[#allocation7 + $0x10] sm:$0xff] }
 0x591   :  { %656 = vadd.xlane.f32.xlu0 %v655_v5 }
 0x616   :  { %v654_v32 = vpop.xlane.xlu0 %653 }
 0x617   :  { %v658_v33 = vmul.f32 0.03125, %v654_v32 }
 0x619   :  { %v660_v34 = vadd.f32 1e-05, %v658_v33 }
 0x61a   :  { %v657_v35 = vpop.xlane.xlu0 %656 }
 0x61b   :  { %1354 = vrsqrt.f32 %v660_v34  ;;  %v659_v36 = vmul.f32 0.03125, %v657_v35 }
 0x61d   :  { %v661_v37 = vadd.f32 1e-05, %v659_v36 }
 0x61f   :  { %1356 = vrsqrt.f32 %v661_v37 }
 0x628   :  { %v1355_v41 = vpop.eup %1354 }
 0x629   :  { %v664_v42 = vmul.f32 %v1355_v41, %v648_v23 }
 0x62b   :  { %v670_v44 = vmul.f32 %v669_v40, %v664_v42 }
 0x62c   :  { %v1357_v45 = vpop.eup %1356 }
 0x62d   :  { %v665_v46 = vmul.f32 %v1357_v45, %v649_v21  ;;  %v1643_v47 = vadd.f32 %v675_v43, %v670_v44  ;;  %v1064_v44 = vsel %vm1063_vm8, %v1589_v22, 0.0 }
 0x62f   :  { %v671_v48 = vmul.f32 %v669_v40, %v665_v46  ;;  %1290 = vmatprep.mubr.msk.f32.mxu1 %vm96_vm0, %v1643_v47 }
 0x631   :  { %v1647_v49 = vadd.f32 %v675_v43, %v671_v48 }
 0x633   :  { %1291 = vmatmul.mubr.msk.f32.vlgmr.msra.gmra.mxu1 %vm96_vm0, %v1647_v49 }
 0x634   :  { %1314 = vmatprep.mubr.msk.f32.mxu1 %vm1483_vm1, %v1482_v6 }
 0x6f3   :  { %v1292_v60 = vpop.f32.mrf.mxu1 }
 0x6f4   :  { %v764_v61 = vadd.f32 %v1292_v60, %v685_v59 }
 0x6f5   :  { %v758_v62 = vpop.f32.mrf.mxu1 }
 0x6f6   :  { %v768_v63 = vmul.f32 %v764_v61, %v764_v61  ;;  %v759_v0 = vadd.f32 %v758_v62, %v685_v59  ;;  %v1074_v62 = vld [vmem:[#allocation7] sm:$0xff] }
 0x6f8   :  { %v770_v1 = vmul.f32 %v768_v63, %v764_v61  ;;  %v767_v3 = vmul.f32 %v759_v0, %v759_v0 }
 0x6fa   :  { %v772_v4 = vmul.f32 0.044715, %v770_v1  ;;  %v769_v7 = vmul.f32 %v767_v3, %v759_v0 }
 0x6fc   :  { %v774_v9 = vadd.f32 %v772_v4, %v764_v61  ;;  %v771_v11 = vmul.f32 0.044715, %v769_v7 }
 0x6fe   :  { %v776_v12 = vmul.f32 0.7978846, %v774_v9  ;;  %v773_v13 = vadd.f32 %v771_v11, %v759_v0 }
 0x700   :  { %1358 = vtanh.f32 %v776_v12  ;;  %v775_v14 = vmul.f32 0.7978846, %v773_v13 }
 0x702   :  { %1360 = vtanh.f32 %v775_v14  ;;  %v1193_v14 = vld [vmem:[#allocation8 + $0x8] ss:$0 sm:$0xff] }
 0x70d   :  { %v1359_v15 = vpop.eup %1358 }
 0x70e   :  { %v780_v16 = vadd.f32 1.0, %v1359_v15 }
 0x70f   :  { %v1361_v17 = vpop.eup %1360 }
 0x710   :  { %v779_v18 = vadd.f32 1.0, %v1361_v17  ;;  %v782_v19 = vmul.f32 0.5, %v780_v16 }
 0x712   :  { %v781_v20 = vmul.f32 0.5, %v779_v18  ;;  %v784_v23 = vmul.f32 %v782_v19, %v764_v61 }
 0x714   :  { %v783_v21 = vmul.f32 %v781_v20, %v759_v0 }
 0x716   :  { %1309 = vmatprep.mubr.msk.f32.mxu0 %vm797_vm7, %v783_v21 }
 0x717   :  { %1310 = vmatmul.mubr.msk.f32.vlgmr.msra.gmra.mxu0 %vm797_vm7, %v784_v23 }
 0x7d7   :  { %v1311_v28 = vpop.f32.mrf.mxu0 }
 0x7d8   :  { %v876_v2 = vadd.f32 %v1311_v28, %v796_v27 }
 0x7d9   :  { %v870_v5 = vpop.f32.mrf.mxu0 }
 0x7da   :  { %v871_v29 = vadd.f32 %v870_v5, %v796_v27  ;;  %v880_v32 = vadd.f32 %v876_v2, %v1647_v49 }
 0x7dc   :  { %v879_v30 = vadd.f32 %v871_v29, %v1643_v47  ;;  %v884_v33 = vsel %vm96_vm0, %v880_v32, 0.0 }
 0x7de   :  { %v881_v31 = vsel %vm96_vm0, %v879_v30, 0.0 }
 0x7df   :  { %882 = vadd.xlane.f32.xlu0 %v881_v31 }
 0x7e3   :  { %885 = vadd.xlane.f32.xlu0 %v884_v33 }
 0x868   :  { %v883_v34 = vpop.xlane.xlu0 %882 }
 0x869   :  { %v887_v35 = vmul.f32 0.03125, %v883_v34 }
 0x86b   :  { %v889_v36 = vsub.f32 %v879_v30, %v887_v35 }
 0x86c   :  { %v886_v37 = vpop.xlane.xlu0 %885 }
 0x86d   :  { %v888_v38 = vmul.f32 0.03125, %v886_v37  ;;  %v891_v39 = vmul.f32 %v889_v36, %v889_v36 }
 0x86f   :  { %v890_v40 = vsub.f32 %v880_v32, %v888_v38  ;;  %v893_v41 = vsel %vm96_vm0, %v891_v39, 0.0 }
 0x870   :  { %894 = vadd.xlane.f32.xlu0 %v893_v41 }
 0x871   :  { %v892_v42 = vmul.f32 %v890_v40, %v890_v40 }
 0x873   :  { %v896_v43 = vsel %vm96_vm0, %v892_v42, 0.0 }
 0x874   :  { %897 = vadd.xlane.f32.xlu0 %v896_v43 }
 0x878   :  { %1065 = vadd.xlane.f32.xlu0 %v1064_v44 }
 0x8f9   :  { %v895_v45 = vpop.xlane.xlu0 %894 }
 0x8fa   :  { %v899_v46 = vmul.f32 0.03125, %v895_v45 }
 0x8fc   :  { %v901_v47 = vadd.f32 1e-05, %v899_v46 }
 0x8fd   :  { %v898_v48 = vpop.xlane.xlu0 %897 }
 0x8fe   :  { %1362 = vrsqrt.f32 %v901_v47  ;;  %v900_v49 = vmul.f32 0.03125, %v898_v48 }
 0x900   :  { %v902_v50 = vadd.f32 1e-05, %v900_v49 }
 0x902   :  { %1364 = vrsqrt.f32 %v902_v50 }
 0x90b   :  { %v1363_v54 = vpop.eup %1362 }
 0x90c   :  { %v905_v55 = vmul.f32 %v1363_v54, %v889_v36 }
 0x90e   :  { %v911_v22 = vmul.f32 %v910_v53, %v905_v55 }
 0x90f   :  { %v1365_v57 = vpop.eup %1364 }
 0x910   :  { %v917_v58 = vadd.f32 %v916_v56, %v911_v22  ;;  %v906_v59 = vmul.f32 %v1365_v57, %v890_v40 }
 0x912   :  { %1313 = vmatpush3.msra.mxu1 %v917_v58  ;;  %v912_v60 = vmul.f32 %v910_v53, %v906_v59 }
 0x913   :  { %1315 = vmatmul.mubr.msk.f32.vlgmr.msra.gmra.mxu1 %vm373_vm5, %v1592_v24  ;;  %1317 = vmatprep.subr.mxu1 %v1482_v6  ;;  %v1075_v24 = vld [vmem:[#allocation7 + $0x8] sm:$0xff] }
 0x914   :  { %v918_v61 = vadd.f32 %v916_v56, %v912_v60  ;;  %1319 = vmatprep.mubr.msk.f32.mxu1 %vm1483_vm1, %v1482_v6 }
 0x916   :  { %1318 = vmatpush3.msra.mxu1 %v918_v61 }
 0x917   :  { %1320 = vmatmul.mubr.msk.f32.vlgmr.msra.gmra.mxu1 %vm373_vm5, %v1595_v26  ;;  %1322 = vmatprep.subr.mxu1 %v1482_v6  ;;  %v1066_v26 = vpop.xlane.xlu0 %1065 }
 0x918   :  { %1330 = vmatprep.mubr.msk.f32.mxu1 %vm1483_vm1, %v1482_v6  ;;  %1323 = vmatpush3.msra.mxu1 %v1077_v8  ;;  %1366 = vrcp.f32 %v1066_v26 }
 0x919   :  { %1324 = vmatprep.subr.mxu1 %v1482_v6 }
 0x91a   :  { %1325 = vmatpush3.msra.mxu1 %v1076_v10 }
 0x91b   :  { %1326 = vmatprep.subr.mxu1 %v1482_v6 }
 0x91c   :  { %1327 = vmatpush3.msra.mxu1 %v1075_v24 }
 0x91d   :  { %1328 = vmatprep.subr.mxu1 %v1482_v6 }
 0x91e   :  { %1329 = vmatpush3.msra.mxu1 %v1074_v62 }
 0x925   :  { %v1367_v63 = vpop.eup %1366 }
 0x926   :  { %v1069_v1 = vrot.slane %v1367_v63, 1 }
 0x9d3   :  { %v987_v0 = vpop.f32.mrf.mxu1 }
 0x9d4   :  { %v1072_v11 = vmul.f32 %v1367_v63, %v987_v0 }
 0x9d5   :  { %v1316_v3 = vpop.f32.mrf.mxu1 }
 0x9d7   :  { %v1059_v4 = vpop.f32.mrf.mxu1 }
 0x9d8   :  { %v1073_v7 = vmul.f32 %v1069_v1, %v1059_v4 }
 0x9d9   :  { %v1321_v9 = vpop.f32.mrf.mxu1 }
 0x9da   :  { %v1084_v12 = vrot.slane %v1073_v7, 7 }
 0x9dc   :  { %v1086_v13 = vsel %vm1085_vm9, %v1084_v12, %v1072_v11 }
 0x9dd   :  { %1331 = vmatmul.mubr.msk.f32.vlgmr.msra.gmra.mxu1 %vm96_vm0, %v1086_v13 }
 0xa9d   :  { %v1155_v6 = vpop.f32.mrf.mxu1 }
 0xa9e   :  { %v1156_v15 = vadd.f32 %v1193_v14, %v1155_v6 }
 0xa9f   :  { %v1332_v16 = vpop.f32.mrf.mxu1 }
 0xaa0   :  { %1159 = vst [vmem:[#allocation10] sm:$0x3] %v1156_v15 }
 0xaa1   :  { %1459 = shalt.err (!%p1456_p10)
}
 0xaa2   :  { %1169 = dma.vmem_to_hbm [thread:$0]  %s1167_s13, 32, %s1717_s8, [#allocation4]  }
 0xaa3   :  { %1474 = dma.done.wait [#allocation4], 32  }
 0xaa4   :  { %1475 = vsyncadd [#allocation4], 4294967264 }
 0xaa5   :  { %1173 = vsyncpa [#allocation3], 1 }
 0xaa6   :  { %1174 = vsyncpa [#allocation6], 1 }
 0xaa7   :  { %1175 = vsyncpa [#allocation9], 1 }
 0xaa8   :  { %1176 = vsyncpa [#allocation4], 1 }

</bundles_post_ra>
